<compile_context>
chip_gen: v7x
topology: tpu7x:2x2x1
jax: 0.10.0
libtpu: 0.0.40
codegen_flags: <defaults>
</compile_context>

<pallas_src>
import numpy as np
import jax
import jax.numpy as jnp
from jax import lax
from jax.experimental import pallas as pl
from jax.experimental.pallas import tpu as pltpu

LAYER_DIMS = [128, 64, 64, 32, 16, 1]      # output dims of the 6 Linear layers
MXU_ROW_OFFS = [0, 128, 192, 256, 288]     # row offsets of W1..W5 / b1..b5 in the slabs
W_SLAB_ROWS = 304                          # 128 + 64 + 64 + 32 + 16
W6T_OFF = 304                              # rows [304, 320) of the f32 slab: W6^T
B6_OFF = 320                               # row 320 of the f32 slab: b6
E_SLAB_ROWS = 328                          # padded to a multiple of 8 sublanes
BN_EPS = 1e-5


def _round_up(n, m):
    return (n + m - 1) // m * m


# ----------------------------------------------------------------------------- kernel

def _make_kernel(input_dim):
    dims = [input_dim] + LAYER_DIMS

    def kernel(x_ref, w_ref, e_ref, o_ref):
        # x_ref: (tile_b, D) f32 ; w_ref: (304, W) bf16 ; e_ref: (328, 1) f32 ;
        # o_ref: (1, tile_b) f32.
        xb = x_ref[...].astype(jnp.bfloat16)                    # in-kernel bf16 cast

        # Layer 1: contract the last dims of W1 (128, D) and x (tile_b, D) so the
        # activation is produced already transposed as (128, tile_b).
        w1 = w_ref[0:128, 0:input_dim]
        z = lax.dot_general(w1, xb, (((1,), (1,)), ((), ())),
                            preferred_element_type=jnp.float32)
        h = jnp.maximum(z + e_ref[0:128, :], 0.0).astype(jnp.bfloat16)

        # Layers 2..5 on the MXU: (dout, din) @ (din, tile_b).
        # (Dropout layers between them are identity in eval mode.)
        for li in range(1, 5):
            off, dout, din = MXU_ROW_OFFS[li], dims[li + 1], dims[li]
            z = jnp.dot(w_ref[off:off + dout, 0:din], h,
                        preferred_element_type=jnp.float32)
            h = jnp.maximum(z + e_ref[off:off + dout, :], 0.0)
            if li < 4:                       # next consumer is the MXU -> bf16 store
                h = h.astype(jnp.bfloat16)

        # Layer 6 (Linear 16 -> 1) + ReLU on the VPU/XLU: broadcast multiply by
        # W6^T (16, 1) and reduce over the 16 sublanes -> lane-dense (1, tile_b).
        w6t = e_ref[W6T_OFF:W6T_OFF + 16, :]
        b6 = e_ref[B6_OFF:B6_OFF + 1, :]
        z = jnp.sum(h * w6t, axis=0, keepdims=True) + b6
        o_ref[...] = jnp.maximum(z, 0.0)

    return kernel


# ----------------------------------------------------------------------------- params

def make_raw_params(key, input_dim):
    """Deterministic synthetic PyTorch-like parameters (fan-in uniform init)."""
    dims = [input_dim] + LAYER_DIMS
    layers = []
    for li, (din, dout) in enumerate(zip(dims[:-1], dims[1:])):
        key, kw, kb = jax.random.split(key, 3)
        bound = 1.0 / np.sqrt(din)
        layer = dict(
            w=jax.random.uniform(kw, (dout, din), jnp.float32, -bound, bound),
            b=jax.random.uniform(kb, (dout,), jnp.float32, -bound, bound),
        )
        if li < 5:  # first 5 Linear layers are followed by BatchNorm1d
            key, kg, kbt, km, kv = jax.random.split(key, 5)
            layer.update(
                gamma=jax.random.uniform(kg, (dout,), jnp.float32, 0.5, 1.5),
                beta=0.1 * jax.random.normal(kbt, (dout,), jnp.float32),
                mean=0.1 * jax.random.normal(km, (dout,), jnp.float32),
                var=jax.random.uniform(kv, (dout,), jnp.float32, 0.5, 1.5),
            )
        layers.append(layer)
    return layers


def fold_and_pack_params(layers, input_dim):
    """Fold eval-mode BatchNorm1d into each Linear and pack into two slabs:
    a bf16 weight slab (W1..W5) and an f32 epilogue slab (b1..b5, W6^T, b6)."""
    folded = []
    for layer in layers:
        w, b = layer["w"], layer["b"]
        if "gamma" in layer:
            s = layer["gamma"] / jnp.sqrt(layer["var"] + BN_EPS)
            t = layer["beta"] - layer["mean"] * s
            w = w * s[:, None]
            b = b * s + t
        folded.append((np.asarray(w, np.float32), np.asarray(b, np.float32)))

    slab_w = max(128, _round_up(input_dim, 128))
    w_slab = np.zeros((W_SLAB_ROWS, slab_w), np.float32)
    e_slab = np.zeros((E_SLAB_ROWS, 1), np.float32)
    for (w, b), off in zip(folded[:5], MXU_ROW_OFFS):
        dout, din = w.shape
        w_slab[off:off + dout, :din] = w
        e_slab[off:off + dout, 0] = b
    w6, b6 = folded[5]
    e_slab[W6T_OFF:W6T_OFF + 16, 0] = w6[0, :]
    e_slab[B6_OFF, 0] = b6[0]
    return jnp.asarray(w_slab, jnp.bfloat16), jnp.asarray(e_slab, jnp.float32)


# ----------------------------------------------------------------------------- wrapper

def _choose_tile_b(batch, input_dim, requested):
    t = max(128, min(_round_up(requested, 128), _round_up(batch, 128)))
    # >= 2 grid steps when the batch is big enough, so the "parallel" grid axis
    # can shard across v7x's two TensorCores (free on single-TC v5e/v6e).
    if batch >= 256:
        t = min(t, _round_up(pl.cdiv(batch, 2), 128))
    # Keep x double-buffer + f32/bf16 layer temporaries comfortably inside VMEM
    # (also safe under v7x's smaller 64 MiB physical / 32 MiB scoped budget).
    bytes_per_col = 2 * 4 * input_dim + 6 * sum(LAYER_DIMS[:5]) + 16
    t = min(t, max(128, (16 * 1024 * 1024 // bytes_per_col) // 128 * 128))
    return t


def lambdanet_forward(x, w_slab, e_slab, *, tile_b=2048):
    """x: (B, D) float. Returns (B, 1) float32 (eval-mode forward)."""
    B, D = x.shape
    assert w_slab.shape[1] >= D, "weight slab narrower than input_dim"
    tile_b = _choose_tile_b(B, D, tile_b)
    n_tiles = pl.cdiv(B, tile_b)

    dims = [D] + LAYER_DIMS
    flops = 2 * B * sum(a * b for a, b in zip(dims[:-1], dims[1:]))
    bytes_accessed = int(B * D * x.dtype.itemsize + B * 4
                         + w_slab.size * w_slab.dtype.itemsize
                         + e_slab.size * e_slab.dtype.itemsize)

    out = pl.pallas_call(
        _make_kernel(D),
        out_shape=jax.ShapeDtypeStruct((1, B), jnp.float32),
        grid_spec=pltpu.PrefetchScalarGridSpec(
            num_scalar_prefetch=0,
            grid=(n_tiles,),
            in_specs=[
                pl.BlockSpec((tile_b, D), lambda i: (i, 0)),     # x batch tile
                pl.BlockSpec(w_slab.shape, lambda i: (0, 0)),    # bf16 weight slab
                pl.BlockSpec(e_slab.shape, lambda i: (0, 0)),    # f32 epilogue slab
            ],
            out_specs=pl.BlockSpec((1, tile_b), lambda i: (0, i)),
        ),
        compiler_params=pltpu.CompilerParams(
            dimension_semantics=("parallel",),
            vmem_limit_bytes=32 * 1024 * 1024,
        ),
        cost_estimate=pl.CostEstimate(
            flops=flops, transcendentals=0, bytes_accessed=bytes_accessed),
    )(x, w_slab, e_slab)

    return out.reshape(B, 1)


# ----------------------------------------------------------------------------- references

def lambdanet_reference_folded(x, w_slab, e_slab, input_dim):
    """f32 math on the exact folded / bf16-quantized operands the kernel consumes."""
    dims = [input_dim] + LAYER_DIMS
    h = x.astype(jnp.bfloat16).astype(jnp.float32)
    for li in range(5):
        off, dout, din = MXU_ROW_OFFS[li], dims[li + 1], dims[li]
        w = w_slab[off:off + dout, :din].astype(jnp.float32)
        b = e_slab[off:off + dout, 0]
        h = jnp.maximum(h @ w.T + b, 0.0)
        if li < 4:
            h = h.astype(jnp.bfloat16).astype(jnp.float32)
    w6t = e_slab[W6T_OFF:W6T_OFF + 16, 0]
    b6 = e_slab[B6_OFF, 0]
    return jnp.maximum(h @ w6t + b6, 0.0).reshape(-1, 1)


def lambdanet_reference_f32(x, layers):
    """Full-precision, unfolded eval-mode reference from the raw parameters."""
    h = x
    for layer in layers:
        h = h @ layer["w"].T + layer["b"]
        if "gamma" in layer:
            h = (h - layer["mean"]) / jnp.sqrt(layer["var"] + BN_EPS)
            h = h * layer["gamma"] + layer["beta"]
        h = jnp.maximum(h, 0.0)
    return h


# ----------------------------------------------------------------------------- main

if __name__ == "__main__":
    key = jax.random.PRNGKey(0)
    kx, kp = jax.random.split(key)

    batch, input_dim = 64, 32
    x = jax.random.normal(kx, (batch, input_dim), jnp.float32)

    raw_layers = make_raw_params(kp, input_dim)
    w_slab, e_slab = fold_and_pack_params(raw_layers, input_dim)

    out = jax.block_until_ready(lambdanet_forward(x, w_slab, e_slab))
    assert out.shape == (batch, 1), out.shape

    # Tight check: reference using the same folded/bf16 operands as the kernel.
    ref_bf16 = lambdanet_reference_folded(x, w_slab, e_slab, input_dim)
    np.testing.assert_allclose(np.asarray(out), np.asarray(ref_bf16),
                               rtol=1e-3, atol=1e-3)

    # Loose sanity check against the full-f32, unfolded eval-mode forward
    # (difference is only bf16 rounding of x and of the folded weights).
    ref_f32 = lambdanet_reference_f32(x, raw_layers)
    np.testing.assert_allclose(np.asarray(out), np.asarray(ref_f32),
                               rtol=1e-1, atol=1e-1)

    print("KERNEL_OK")
</pallas_src>

<mosaic_0001>
module attributes {stable_mosaic.version = 11 : i64} {
  func.func @kernel(%arg0: i32, %arg1: memref<128x32xf32, #tpu.memory_space<vmem>>, %arg2: memref<304x128xbf16, #tpu.memory_space<vmem>>, %arg3: memref<328x1xf32, #tpu.memory_space<vmem>>, %arg4: memref<1x128xf32, #tpu.memory_space<vmem>>) attributes {dimension_semantics = [#tpu.dimension_semantics<parallel>], iteration_bounds = array<i64: 1>, scalar_prefetch = 0 : i64, scratch_operands = 0 : i64, tpu.core_type = #tpu.core_type<tc>, window_params = [{transform_indices = @transform_0, window_bounds = array<i64: 128, 32>}, {pipeline_mode = #tpu.pipeline_mode<synchronous>, transform_indices = @transform_1, window_bounds = array<i64: 304, 128>}, {pipeline_mode = #tpu.pipeline_mode<synchronous>, transform_indices = @transform_2, window_bounds = array<i64: 328, 1>}, {transform_indices = @transform_3, window_bounds = array<i64: 1, 128>}]} {
    %c0 = arith.constant 0 : index
    %c0_0 = arith.constant 0 : index
    %0 = vector.load %arg1[%c0, %c0_0] : memref<128x32xf32, #tpu.memory_space<vmem>>, vector<128x32xf32>
    %1 = arith.truncf %0 : vector<128x32xf32> to vector<128x32xbf16>
    %c0_1 = arith.constant 0 : index
    %c0_2 = arith.constant 0 : index
    %2 = vector.load %arg2[%c0_1, %c0_2] : memref<304x128xbf16, #tpu.memory_space<vmem>>, vector<128x32xbf16>
    %cst = arith.constant dense<0.000000e+00> : vector<128x128xf32>
    %3 = tpu.matmul %2, %1, %cst {dimension_numbers = #tpu.dot_dimension_numbers<[1], [1], [0], [0], [0, 0, 1, 0], [], []>} : vector<128x32xbf16>, vector<128x32xbf16>, vector<128x128xf32> -> vector<128x128xf32>
    %c0_3 = arith.constant 0 : index
    %c0_4 = arith.constant 0 : index
    %4 = vector.load %arg3[%c0_3, %c0_4] : memref<328x1xf32, #tpu.memory_space<vmem>>, vector<128x1xf32>
    %5 = vector.broadcast %4 : vector<128x1xf32> to vector<128x128xf32>
    %6 = arith.addf %3, %5 : vector<128x128xf32>
    %cst_5 = arith.constant 0.000000e+00 : f32
    %7 = vector.broadcast %cst_5 : f32 to vector<128x128xf32>
    %8 = arith.maximumf %6, %7 : vector<128x128xf32>
    %9 = arith.truncf %8 : vector<128x128xf32> to vector<128x128xbf16>
    %c128 = arith.constant 128 : index
    %c0_6 = arith.constant 0 : index
    %10 = vector.load %arg2[%c128, %c0_6] : memref<304x128xbf16, #tpu.memory_space<vmem>>, vector<64x128xbf16>
    %cst_7 = arith.constant dense<0.000000e+00> : vector<64x128xf32>
    %11 = tpu.matmul %10, %9, %cst_7 {dimension_numbers = #tpu.dot_dimension_numbers<[1], [0], [0], [1], [0, 0, 1, 1], [], []>} : vector<64x128xbf16>, vector<128x128xbf16>, vector<64x128xf32> -> vector<64x128xf32>
    %c128_8 = arith.constant 128 : index
    %c0_9 = arith.constant 0 : index
    %12 = vector.load %arg3[%c128_8, %c0_9] : memref<328x1xf32, #tpu.memory_space<vmem>>, vector<64x1xf32>
    %13 = vector.broadcast %12 : vector<64x1xf32> to vector<64x128xf32>
    %14 = arith.addf %11, %13 : vector<64x128xf32>
    %cst_10 = arith.constant 0.000000e+00 : f32
    %15 = vector.broadcast %cst_10 : f32 to vector<64x128xf32>
    %16 = arith.maximumf %14, %15 : vector<64x128xf32>
    %17 = arith.truncf %16 : vector<64x128xf32> to vector<64x128xbf16>
    %c192 = arith.constant 192 : index
    %c0_11 = arith.constant 0 : index
    %18 = vector.load %arg2[%c192, %c0_11] : memref<304x128xbf16, #tpu.memory_space<vmem>>, vector<64x64xbf16>
    %cst_12 = arith.constant dense<0.000000e+00> : vector<64x128xf32>
    %19 = tpu.matmul %18, %17, %cst_12 {dimension_numbers = #tpu.dot_dimension_numbers<[1], [0], [0], [1], [0, 0, 1, 1], [], []>} : vector<64x64xbf16>, vector<64x128xbf16>, vector<64x128xf32> -> vector<64x128xf32>
    %c192_13 = arith.constant 192 : index
    %c0_14 = arith.constant 0 : index
    %20 = vector.load %arg3[%c192_13, %c0_14] : memref<328x1xf32, #tpu.memory_space<vmem>>, vector<64x1xf32>
    %21 = vector.broadcast %20 : vector<64x1xf32> to vector<64x128xf32>
    %22 = arith.addf %19, %21 : vector<64x128xf32>
    %cst_15 = arith.constant 0.000000e+00 : f32
    %23 = vector.broadcast %cst_15 : f32 to vector<64x128xf32>
    %24 = arith.maximumf %22, %23 : vector<64x128xf32>
    %25 = arith.truncf %24 : vector<64x128xf32> to vector<64x128xbf16>
    %c256 = arith.constant 256 : index
    %c0_16 = arith.constant 0 : index
    %26 = vector.load %arg2[%c256, %c0_16] : memref<304x128xbf16, #tpu.memory_space<vmem>>, vector<32x64xbf16>
    %cst_17 = arith.constant dense<0.000000e+00> : vector<32x128xf32>
    %27 = tpu.matmul %26, %25, %cst_17 {dimension_numbers = #tpu.dot_dimension_numbers<[1], [0], [0], [1], [0, 0, 1, 1], [], []>} : vector<32x64xbf16>, vector<64x128xbf16>, vector<32x128xf32> -> vector<32x128xf32>
    %c256_18 = arith.constant 256 : index
    %c0_19 = arith.constant 0 : index
    %28 = vector.load %arg3[%c256_18, %c0_19] : memref<328x1xf32, #tpu.memory_space<vmem>>, vector<32x1xf32>
    %29 = vector.broadcast %28 : vector<32x1xf32> to vector<32x128xf32>
    %30 = arith.addf %27, %29 : vector<32x128xf32>
    %cst_20 = arith.constant 0.000000e+00 : f32
    %31 = vector.broadcast %cst_20 : f32 to vector<32x128xf32>
    %32 = arith.maximumf %30, %31 : vector<32x128xf32>
    %33 = arith.truncf %32 : vector<32x128xf32> to vector<32x128xbf16>
    %c288 = arith.constant 288 : index
    %c0_21 = arith.constant 0 : index
    %34 = vector.load %arg2[%c288, %c0_21] : memref<304x128xbf16, #tpu.memory_space<vmem>>, vector<16x32xbf16>
    %cst_22 = arith.constant dense<0.000000e+00> : vector<16x128xf32>
    %35 = tpu.matmul %34, %33, %cst_22 {dimension_numbers = #tpu.dot_dimension_numbers<[1], [0], [0], [1], [0, 0, 1, 1], [], []>} : vector<16x32xbf16>, vector<32x128xbf16>, vector<16x128xf32> -> vector<16x128xf32>
    %c288_23 = arith.constant 288 : index
    %c0_24 = arith.constant 0 : index
    %36 = vector.load %arg3[%c288_23, %c0_24] : memref<328x1xf32, #tpu.memory_space<vmem>>, vector<16x1xf32>
    %37 = vector.broadcast %36 : vector<16x1xf32> to vector<16x128xf32>
    %38 = arith.addf %35, %37 : vector<16x128xf32>
    %cst_25 = arith.constant 0.000000e+00 : f32
    %39 = vector.broadcast %cst_25 : f32 to vector<16x128xf32>
    %40 = arith.maximumf %38, %39 : vector<16x128xf32>
    %c304 = arith.constant 304 : index
    %c0_26 = arith.constant 0 : index
    %41 = vector.load %arg3[%c304, %c0_26] : memref<328x1xf32, #tpu.memory_space<vmem>>, vector<16x1xf32>
    %c320 = arith.constant 320 : index
    %c0_27 = arith.constant 0 : index
    %42 = vector.load %arg3[%c320, %c0_27] : memref<328x1xf32, #tpu.memory_space<vmem>>, vector<1x1xf32>
    %43 = vector.broadcast %41 : vector<16x1xf32> to vector<16x128xf32>
    %44 = arith.mulf %40, %43 : vector<16x128xf32>
    %cst_28 = arith.constant dense<0.000000e+00> : vector<128xf32>
    %45 = vector.multi_reduction <add>, %44, %cst_28 [0] : vector<16x128xf32> to vector<128xf32>
    %46 = vector.shape_cast %45 : vector<128xf32> to vector<1x128xf32>
    %47 = vector.broadcast %42 : vector<1x1xf32> to vector<1x128xf32>
    %48 = arith.addf %46, %47 : vector<1x128xf32>
    %cst_29 = arith.constant 0.000000e+00 : f32
    %49 = vector.broadcast %cst_29 : f32 to vector<1x128xf32>
    %50 = arith.maximumf %48, %49 : vector<1x128xf32>
    %c0_30 = arith.constant 0 : index
    %c0_31 = arith.constant 0 : index
    %51 = vector.load %arg4[%c0_30, %c0_31] : memref<1x128xf32, #tpu.memory_space<vmem>>, vector<1x128xf32>
    tpu.vector_store %arg4[%c0_30, %c0_31], %50 {strides = array<i32>} : memref<1x128xf32, #tpu.memory_space<vmem>>, vector<1x128xf32>,
    return
  }
  func.func @transform_0(%arg0: i32) -> (i32, i32) {
    %c0_i32 = arith.constant 0 : i32
    %c0_i32_0 = arith.constant 0 : i32
    return %arg0, %c0_i32 : i32, i32
  }
  func.func @transform_1(%arg0: i32) -> (i32, i32) {
    %c0_i32 = arith.constant 0 : i32
    %c0_i32_0 = arith.constant 0 : i32
    %c0_i32_1 = arith.constant 0 : i32
    return %c0_i32, %c0_i32_0 : i32, i32
  }
  func.func @transform_2(%arg0: i32) -> (i32, i32) {
    %c0_i32 = arith.constant 0 : i32
    %c0_i32_0 = arith.constant 0 : i32
    %c0_i32_1 = arith.constant 0 : i32
    return %c0_i32, %c0_i32_0 : i32, i32
  }
  func.func @transform_3(%arg0: i32) -> (i32, i32) {
    %c0_i32 = arith.constant 0 : i32
    %c0_i32_0 = arith.constant 0 : i32
    return %c0_i32, %arg0 : i32, i32
  }
}

</mosaic_0001>

<bundles_post_ra>
// kernel: tpu_custom_call.1
= control target key start
LH: loop header
LB: loop body
LE: loop exit
PB: predicated region body
PF: predicated region fallthrough
CT: control target
= control target key end

     0   :  { %vm192_vm0 = vcmask 261120   ;;  %v1121_v5 = vmov 0   ;;  %s1416_s0 = inlined_call_operand.vmem [shape: f32[64,32], index: 0, kind: input, shape index: {}]   ;;  %s1417_s1 = inlined_call_operand.vmem [shape: bf16[304,128], index: 1, kind: input, shape index: {}]   ;;  %s1418_s2 = inlined_call_operand.vmem [shape: f32[328,1], index: 2, kind: input, shape index: {}]   ;;  %s1419_s3 = inlined_call_operand.hbm [shape: f32[1,64], index: 3, kind: output, shape index: {}]  }
   0x1   :  { %v16_v0 = vld [vmem:[%s1416_s0] sm:$0xff]  ;;  %v17_v1 = vld [vmem:[%s1416_s0 + $0x8] sm:$0xff]  ;;  %v18_v2 = vld [vmem:[%s1416_s0 + $0x10] sm:$0xff]  ;;  %1076 = vset.pattern.permute.xlu0 %v1121_v5  ;;  %1077 = vset.pattern.permute.xlu1 %v1121_v5 }
   0x2   :  { %v32_v3 = vpack.c.bf16 %v17_v1, %v16_v0  ;;  %v19_v4 = vld [vmem:[%s1416_s0 + $0x18] sm:$0xff]  ;;  %v20_v8 = vld [vmem:[%s1416_s0 + $0x20] sm:$0xff]  ;;  %v21_v9 = vld [vmem:[%s1416_s0 + $0x28] sm:$0xff] }
   0x3   :  { %v33_v6 = vpack.c.bf16 %v19_v4, %v18_v2  ;;  %v1078_v10 = vld [vmem:[%s1417_s1] sm:$0xff]   ;;  %v34_v13 = vpack.c.bf16 %v21_v9, %v20_v8  ;;  %v57_v14 = vld [vmem:[%s1418_s2 + $0x8] sm:$0xff]  ;;  %v58_v15 = vld [vmem:[%s1418_s2 + $0x10] sm:$0xff] }
   0x4   :  { %1064 = vmatprep.subr.msk.bf16.mxu0 %vm192_vm0, %v32_v3  ;;  %v218_v7 = vsel %vm192_vm0, %v32_v3, 0  ;;  %v56_v11 = vld [vmem:[%s1418_s2] sm:$0xff]  ;;  %988 = vmatprep.mubr.msk.bf16.mxu0 %vm192_vm0, %v1078_v10  ;;  %v59_v16 = vld [vmem:[%s1418_s2 + $0x18] sm:$0xff]  ;;  %v22_v18 = vld [vmem:[%s1416_s0 + $0x30] sm:$0xff] }
   0x5   :  { %973 = vmatpush3.bf16.xpose.msra.mxu0 %v218_v7  ;;  %74 = vperm.xlu0 %1076, %v56_v11   ;;  %v221_v12 = vsel %vm192_vm0, %v33_v6, 0  ;;  %v60_v17 = vld [vmem:[%s1418_s2 + $0x20] sm:$0xff]  ;;  %v23_v19 = vld [vmem:[%s1416_s0 + $0x38] sm:$0xff]  ;;  %v61_v20 = vld [vmem:[%s1418_s2 + $0x28] sm:$0xff]  ;;  %v224_v21 = vsel %vm192_vm0, %v34_v13, 0 }
   0x6   :  { %1065 = vmatprep.subr.msk.bf16.mxu0 %vm192_vm0, %v33_v6  ;;  %84 = vperm.xlu1 %1077, %v58_v15   ;;  %v35_v22 = vpack.c.bf16 %v23_v19, %v22_v18  ;;  %v62_v23 = vld [vmem:[%s1418_s2 + $0x30] sm:$0xff]  ;;  %v24_v24 = vld [vmem:[%s1416_s0 + $0x40] sm:$0xff]  ;;  %v25_v25 = vld [vmem:[%s1416_s0 + $0x48] sm:$0xff] }
   0x7   :  { %v63_v26 = vld [vmem:[%s1418_s2 + $0x38] sm:$0xff]  ;;  %v64_v27 = vld [vmem:[%s1418_s2 + $0x40] sm:$0xff]  ;;  %v36_v28 = vpack.c.bf16 %v25_v25, %v24_v24  ;;  %v65_v29 = vld [vmem:[%s1418_s2 + $0x48] sm:$0xff] }
   0x8   :  { %v227_v30 = vsel %vm192_vm0, %v35_v22, 0  ;;  %v66_v31 = vld [vmem:[%s1418_s2 + $0x50] sm:$0xff]  ;;  %v67_v33 = vld [vmem:[%s1418_s2 + $0x58] sm:$0xff]  ;;  %v68_v34 = vld [vmem:[%s1418_s2 + $0x60] sm:$0xff] }
   0x9   :  { %79 = vperm.xlu0 %1076, %v57_v14   ;;  %v230_v32 = vsel %vm192_vm0, %v36_v28, 0  ;;  %v26_v35 = vld [vmem:[%s1416_s0 + $0x50] sm:$0xff]  ;;  %v27_v36 = vld [vmem:[%s1416_s0 + $0x58] sm:$0xff]  ;;  %v69_v37 = vld [vmem:[%s1418_s2 + $0x68] sm:$0xff] }
   0xa   :  { %89 = vperm.xlu1 %1077, %v59_v16   ;;  %v70_v38 = vld [vmem:[%s1418_s2 + $0x70] sm:$0xff]  ;;  %v37_v39 = vpack.c.bf16 %v27_v36, %v26_v35 }
   0xd   :  { %975 = vmatpush3.bf16.xpose.msra.mxu0 %v221_v12  ;;  %94 = vperm.xlu0 %1076, %v60_v17  }
   0xe   :  { %1066 = vmatprep.subr.msk.bf16.mxu0 %vm192_vm0, %v34_v13  ;;  %99 = vperm.xlu1 %1077, %v61_v20  }
  0x11   :  { %104 = vperm.xlu0 %1076, %v62_v23  }
  0x12   :  { %109 = vperm.xlu1 %1077, %v63_v26  }
  0x15   :  { %977 = vmatpush3.bf16.xpose.msra.mxu0 %v224_v21  ;;  %114 = vperm.xlu0 %1076, %v64_v27  }
  0x16   :  { %1067 = vmatprep.subr.msk.bf16.mxu0 %vm192_vm0, %v35_v22  ;;  %119 = vperm.xlu1 %1077, %v65_v29  }
  0x19   :  { %124 = vperm.xlu0 %1076, %v66_v31  }
  0x1a   :  { %129 = vperm.xlu1 %1077, %v67_v33  }
  0x1d   :  { %979 = vmatpush3.bf16.xpose.msra.mxu0 %v227_v30  ;;  %134 = vperm.xlu0 %1076, %v68_v34  }
  0x1e   :  { %1068 = vmatprep.subr.msk.bf16.mxu0 %vm192_vm0, %v36_v28 }
  0x1f   :  { %8 = vsyncpa [#allocation3], 0  ;;  %139 = vperm.xlu1 %1077, %v69_v37   ;;  %v71_v40 = vld [vmem:[%s1418_s2 + $0x78] sm:$0xff]  ;;  %v370_v41 = vld [vmem:[%s1418_s2 + $0x80] sm:$0xff]  ;;  %v233_v45 = vsel %vm192_vm0, %v37_v39, 0  ;;  %vm595_vm1 = vcmask 523264  }
  0x20   :  { %v28_v42 = vld [vmem:[%s1416_s0 + $0x60] sm:$0xff]  ;;  %v29_v43 = vld [vmem:[%s1416_s0 + $0x68] sm:$0xff]  ;;  %v372_v47 = vld [vmem:[%s1418_s2 + $0x90] sm:$0xff]  ;;  %vm1123_vm2 = vmmov 0  }
  0x21   :  { %144 = vperm.xlu0 %1076, %v70_v38   ;;  %v371_v44 = vld [vmem:[%s1418_s2 + $0x88] sm:$0xff]  ;;  %v38_v46 = vpack.c.bf16 %v29_v43, %v28_v42  ;;  %v373_v48 = vld [vmem:[%s1418_s2 + $0x98] sm:$0xff]  ;;  %v374_v49 = vld [vmem:[%s1418_s2 + $0xa0] sm:$0xff] }
  0x22   :  { %v30_v50 = vld [vmem:[%s1416_s0 + $0x70] sm:$0xff]  ;;  %v31_v51 = vld [vmem:[%s1416_s0 + $0x78] sm:$0xff]  ;;  %v375_v52 = vld [vmem:[%s1418_s2 + $0xa8] sm:$0xff] }
  0x23   :  { %149 = vperm.xlu1 %1077, %v71_v40   ;;  %v236_v53 = vsel %vm192_vm0, %v38_v46, 0  ;;  %v39_v54 = vpack.c.bf16 %v31_v51, %v30_v50  ;;  %v376_v55 = vld [vmem:[%s1418_s2 + $0xb0] sm:$0xff]  ;;  %v377_v56 = vld [vmem:[%s1418_s2 + $0xb8] sm:$0xff]  ;;  %v527_v57 = vld [vmem:[%s1418_s2 + $0xc0] sm:$0xff] }
  0x24   :  { %v528_v58 = vld [vmem:[%s1418_s2 + $0xc8] sm:$0xff]  ;;  %v529_v60 = vld [vmem:[%s1418_s2 + $0xd0] sm:$0xff]  ;;  %v530_v61 = vld [vmem:[%s1418_s2 + $0xd8] sm:$0xff] }
  0x25   :  { %981 = vmatpush3.bf16.xpose.msra.mxu0 %v230_v32  ;;  %380 = vperm.xlu0 %1076, %v370_v41   ;;  %v239_v59 = vsel %vm192_vm0, %v39_v54, 0  ;;  %v531_v62 = vld [vmem:[%s1418_s2 + $0xe0] sm:$0xff]  ;;  %v1079_v63 = vld [vmem:[%s1417_s1 + $0x8] sm:$0xff]   ;;  %v1080_v0 = vld [vmem:[%s1417_s1 + $0x10] sm:$0xff]  }
  0x26   :  { %1069 = vmatprep.subr.msk.bf16.mxu0 %vm192_vm0, %v37_v39  ;;  %v532_v1 = vld [vmem:[%s1418_s2 + $0xe8] sm:$0xff]  ;;  %v533_v2 = vld [vmem:[%s1418_s2 + $0xf0] sm:$0xff]  ;;  %v534_v3 = vld [vmem:[%s1418_s2 + $0xf8] sm:$0xff] }
  0x27   :  { %385 = vperm.xlu1 %1077, %v371_v44   ;;  %v689_v4 = vld [vmem:[%s1418_s2 + $0x100] sm:$0xff]  ;;  %v1081_v5 = vld [vmem:[%s1417_s1 + $0x18] sm:$0xff]   ;;  %v690_v7 = vld [vmem:[%s1418_s2 + $0x108] sm:$0xff] }
  0x28   :  { %v1082_v6 = vld [vmem:[%s1417_s1 + $0x20] sm:$0xff]   ;;  %v691_v8 = vld [vmem:[%s1418_s2 + $0x110] sm:$0xff]  ;;  %v692_v9 = vld [vmem:[%s1418_s2 + $0x118] sm:$0xff] }
  0x29   :  { %390 = vperm.xlu0 %1076, %v372_v47   ;;  %v786_v10 = vld [vmem:[%s1418_s2 + $0x120] sm:$0xff]  ;;  %v1083_v11 = vld [vmem:[%s1417_s1 + $0x28] sm:$0xff]   ;;  %v1084_v12 = vld [vmem:[%s1417_s1 + $0x30] sm:$0xff]  }
  0x2a   :  { %v787_v13 = vld [vmem:[%s1418_s2 + $0x128] sm:$0xff]  ;;  %v849_v14 = vld [vmem:[%s1418_s2 + $0x130] sm:$0xff]  ;;  %v850_v15 = vld [vmem:[%s1418_s2 + $0x138] sm:$0xff] }
  0x2b   :  { %395 = vperm.xlu1 %1077, %v373_v48   ;;  %v851_v16 = vld [vmem:[%s1418_s2 + $0x140] sm:$0x1]  ;;  %v1085_v17 = vld [vmem:[%s1417_s1 + $0x38] sm:$0xff]  }
  0x2c   :  { %v1086_v18 = vld [vmem:[%s1417_s1 + $0x40] sm:$0xff]  }
  0x2d   :  { %983 = vmatpush3.bf16.xpose.msra.mxu0 %v233_v45  ;;  %400 = vperm.xlu0 %1076, %v374_v49  }
  0x2e   :  { %1070 = vmatprep.subr.msk.bf16.mxu0 %vm192_vm0, %v38_v46  ;;  %1020 = vmatprep.mubr.bf16.mxu1 %v1086_v18 }
  0x2f   :  { %405 = vperm.xlu1 %1077, %v375_v52  }
  0x31   :  { %410 = vperm.xlu0 %1076, %v376_v55  }
  0x33   :  { %415 = vperm.xlu1 %1077, %v377_v56  }
  0x35   :  { %985 = vmatpush3.bf16.xpose.msra.mxu0 %v236_v53  ;;  %537 = vperm.xlu0 %1076, %v527_v57  }
  0x36   :  { %1071 = vmatprep.subr.msk.bf16.mxu0 %vm192_vm0, %v39_v54 }
  0x37   :  { %542 = vperm.xlu1 %1077, %v528_v58  }
  0x39   :  { %547 = vperm.xlu0 %1076, %v529_v60  }
  0x3b   :  { %552 = vperm.xlu1 %1077, %v530_v61  }
  0x3d   :  { %987 = vmatpush3.bf16.xpose.msra.mxu0 %v239_v59  ;;  %557 = vperm.xlu0 %1076, %v531_v62  }
  0x3f   :  { %562 = vperm.xlu1 %1077, %v532_v1  }
  0x41   :  { %567 = vperm.xlu0 %1076, %v533_v2  }
  0x43   :  { %572 = vperm.xlu1 %1077, %v534_v3  }
  0x44   :  { %989 = vmatmul.mubr.msk.bf16.vlgmr.msra.gmra.mrb[0].mxu0 %vm192_vm0, %v1079_v63 }
  0x45   :  { %992 = vmatprep.mubr.msk.bf16.mxu0 %vm192_vm0, %v1080_v0  ;;  %695 = vperm.xlu0 %1076, %v689_v4  }
  0x47   :  { %700 = vperm.xlu1 %1077, %v690_v7  }
  0x49   :  { %705 = vperm.xlu0 %1076, %v691_v8  }
  0x4b   :  { %710 = vperm.xlu1 %1077, %v692_v9  }
  0x4c   :  { %993 = vmatmul.mubr.msk.bf16.gmra.mrb[4].mxu0 %vm192_vm0, %v1081_v5 }
  0x4d   :  { %996 = vmatprep.mubr.msk.bf16.mxu0 %vm192_vm0, %v1082_v6  ;;  %790 = vperm.xlu0 %1076, %v786_v10  }
  0x4f   :  { %795 = vperm.xlu1 %1077, %v787_v13  }
  0x51   :  { %854 = vperm.xlu0 %1076, %v849_v14  }
  0x53   :  { %859 = vperm.xlu1 %1077, %v850_v15  }
  0x54   :  { %997 = vmatmul.mubr.msk.bf16.gmra.mrb[8].mxu0 %vm192_vm0, %v1083_v11 }
  0x55   :  { %1000 = vmatprep.mubr.msk.bf16.mxu0 %vm192_vm0, %v1084_v12  ;;  %873 = vperm.xlu0 %1076, %v851_v16  }
  0x5c   :  { %1001 = vmatmul.mubr.msk.bf16.gmra.mrb[12].mxu0 %vm192_vm0, %v1085_v17 }
  0x84   :  { %v75_v19 = vpop.permute.xlu0 %74 }
  0x85   :  { %v85_v20 = vpop.permute.xlu1 %84 }
  0x88   :  { %v80_v21 = vpop.permute.xlu0 %79 }
  0x89   :  { %v90_v22 = vpop.permute.xlu1 %89 }
  0x8c   :  { %v95_v23 = vpop.permute.xlu0 %94 }
  0x8d   :  { %v100_v24 = vpop.permute.xlu1 %99 }
  0x90   :  { %v105_v25 = vpop.permute.xlu0 %104 }
  0x91   :  { %v110_v29 = vpop.permute.xlu1 %109 }
  0x94   :  { %v115_v37 = vpop.permute.xlu0 %114 }
  0x95   :  { %v120_v41 = vpop.permute.xlu1 %119 }
  0x98   :  { %v125_v50 = vpop.permute.xlu0 %124 }
  0x99   :  { %v130_v54 = vpop.permute.xlu1 %129 }
  0x9c   :  { %v135_v62 = vpop.permute.xlu0 %134 }
  0x9e   :  { %v140_v3 = vpop.permute.xlu1 %139 }
  0xa0   :  { %v145_v10 = vpop.permute.xlu0 %144 }
  0xa2   :  { %v150_v15 = vpop.permute.xlu1 %149 }
 0x117   :  { %v990_v26 = vpop.f32.mrb[0].mxu0 }
 0x118   :  { %v284_v27 = vadd.f32 %v990_v26, %v85_v20  ;;  %v275_v28 = vpop.f32.mrb[1].mxu0 }
 0x119   :  { %v276_v30 = vadd.f32 %v275_v28, %v75_v19  ;;  %v991_v31 = vpop.f32.mrb[2].mxu0  ;;  %v1088_v28 = vld [vmem:[%s1417_s1 + $0x50] sm:$0xff]  }
 0x11a   :  { %v287_v32 = vadd.f32 %v991_v31, %v90_v22  ;;  %v278_v33 = vpop.f32.mrb[3].mxu0  ;;  %v340_v35 = vmax.f32 %v284_v27, 0.0  ;;  %v1087_v27 = vld [vmem:[%s1417_s1 + $0x48] sm:$0xff]   ;;  %v381_v31 = vpop.permute.xlu0 %380 }
 0x11b   :  { %v279_v34 = vadd.f32 %v278_v33, %v80_v21  ;;  %v338_v38 = vmax.f32 %v276_v30, 0.0  ;;  %v1090_v30 = vld [vmem:[%s1417_s1 + $0x60] sm:$0xff]  }
 0x11c   :  { %v341_v36 = vmax.f32 %v287_v32, 0.0  ;;  %v386_v32 = vpop.permute.xlu1 %385 }
 0x11d   :  { %v339_v39 = vmax.f32 %v279_v34, 0.0 }
 0x11e   :  { %v355_v40 = vpack.c.bf16 %v341_v36, %v340_v35  ;;  %v391_v33 = vpop.permute.xlu0 %390 }
 0x11f   :  { %v994_v42 = vpop.f32.mrb[4].mxu0  ;;  %v354_v43 = vpack.c.bf16 %v339_v39, %v338_v38 }
 0x120   :  { %v300_v44 = vadd.f32 %v994_v42, %v105_v25  ;;  %v291_v45 = vpop.f32.mrb[5].mxu0  ;;  %v396_v34 = vpop.permute.xlu1 %395 }
 0x121   :  { %v292_v46 = vadd.f32 %v291_v45, %v95_v23  ;;  %v995_v47 = vpop.f32.mrb[6].mxu0  ;;  %1004 = vmatprep.subr.bf16.mxu1 %v354_v43 }
 0x122   :  { %v303_v48 = vadd.f32 %v995_v47, %v110_v29  ;;  %v294_v49 = vpop.f32.mrb[7].mxu0  ;;  %1005 = vmatpush3.bf16.msra.mxu1 %v354_v43  ;;  %v344_v52 = vmax.f32 %v300_v44, 0.0  ;;  %v1089_v29 = vld [vmem:[%s1417_s1 + $0x58] sm:$0xff]   ;;  %v401_v38 = vpop.permute.xlu0 %400 }
 0x123   :  { %v295_v51 = vadd.f32 %v294_v49, %v100_v24  ;;  %1006 = vmatprep.subr.bf16.mxu1 %v355_v40  ;;  %v342_v55 = vmax.f32 %v292_v46, 0.0 }
 0x124   :  { %v345_v53 = vmax.f32 %v303_v48, 0.0  ;;  %v406_v43 = vpop.permute.xlu1 %405 }
 0x125   :  { %v343_v56 = vmax.f32 %v295_v51, 0.0 }
 0x126   :  { %v357_v57 = vpack.c.bf16 %v345_v53, %v344_v52  ;;  %1007 = vmatpush3.bf16.msra.mxu1 %v355_v40 }
 0x127   :  { %v356_v58 = vpack.c.bf16 %v343_v56, %v342_v55  ;;  %v998_v59 = vpop.f32.mrb[8].mxu0 }
 0x128   :  { %v316_v60 = vadd.f32 %v998_v59, %v125_v50  ;;  %v307_v61 = vpop.f32.mrb[9].mxu0  ;;  %v411_v50 = vpop.permute.xlu0 %410 }
 0x129   :  { %v308_v63 = vadd.f32 %v307_v61, %v115_v37  ;;  %v999_v0 = vpop.f32.mrb[10].mxu0  ;;  %1008 = vmatprep.subr.bf16.mxu1 %v356_v58  ;;  %v416_v55 = vpop.permute.xlu1 %415 }
 0x12a   :  { %v319_v1 = vadd.f32 %v999_v0, %v130_v54  ;;  %v310_v2 = vpop.f32.mrb[11].mxu0  ;;  %1009 = vmatpush3.bf16.msra.mxu1 %v356_v58  ;;  %v348_v5 = vmax.f32 %v316_v60, 0.0 }
 0x12b   :  { %v311_v4 = vadd.f32 %v310_v2, %v120_v41  ;;  %1010 = vmatprep.subr.bf16.mxu1 %v357_v57  ;;  %v346_v7 = vmax.f32 %v308_v63, 0.0 }
 0x12c   :  { %v349_v6 = vmax.f32 %v319_v1, 0.0 }
 0x12d   :  { %v347_v8 = vmax.f32 %v311_v4, 0.0  ;;  %v1092_v4 = vld [vmem:[%s1417_s1 + $0x70] sm:$0xff]  }
 0x12e   :  { %v359_v9 = vpack.c.bf16 %v349_v6, %v348_v5  ;;  %1011 = vmatpush3.bf16.msra.mxu1 %v357_v57  ;;  %v1093_v5 = vld [vmem:[%s1417_s1 + $0x78] sm:$0xff]   ;;  %v1094_v6 = vld [vmem:[%s1417_s1 + $0x80] sm:$0xff]  }
 0x12f   :  { %v358_v11 = vpack.c.bf16 %v347_v8, %v346_v7  ;;  %v1002_v12 = vpop.f32.mrb[12].mxu0  ;;  %v538_v7 = vpop.permute.xlu0 %537 }
 0x130   :  { %v332_v13 = vadd.f32 %v1002_v12, %v145_v10  ;;  %v323_v14 = vpop.f32.mrb[13].mxu0  ;;  %v543_v8 = vpop.permute.xlu1 %542 }
 0x131   :  { %v324_v16 = vadd.f32 %v323_v14, %v135_v62  ;;  %v1003_v17 = vpop.f32.mrb[14].mxu0  ;;  %1012 = vmatprep.subr.bf16.mxu1 %v358_v11 }
 0x132   :  { %v335_v18 = vadd.f32 %v1003_v17, %v150_v15  ;;  %v326_v19 = vpop.f32.mrb[15].mxu0  ;;  %1013 = vmatpush3.bf16.msra.mxu1 %v358_v11  ;;  %v352_v21 = vmax.f32 %v332_v13, 0.0 }
 0x133   :  { %v327_v20 = vadd.f32 %v326_v19, %v140_v3  ;;  %1014 = vmatprep.subr.bf16.mxu1 %v359_v9  ;;  %v350_v23 = vmax.f32 %v324_v16, 0.0  ;;  %v1091_v3 = vld [vmem:[%s1417_s1 + $0x68] sm:$0xff]  }
 0x134   :  { %v353_v22 = vmax.f32 %v335_v18, 0.0  ;;  %v553_v10 = vpop.permute.xlu1 %552 }
 0x135   :  { %v351_v24 = vmax.f32 %v327_v20, 0.0 }
 0x136   :  { %v361_v25 = vpack.c.bf16 %v353_v22, %v352_v21  ;;  %1015 = vmatpush3.bf16.msra.mxu1 %v359_v9  ;;  %v548_v9 = vpop.permute.xlu0 %547 }
 0x137   :  { %v360_v26 = vpack.c.bf16 %v351_v24, %v350_v23 }
 0x138   :  { %v563_v19 = vpop.permute.xlu1 %562 }
 0x139   :  { %1016 = vmatprep.subr.bf16.mxu1 %v360_v26 }
 0x13a   :  { %1017 = vmatpush3.bf16.msra.mxu1 %v360_v26  ;;  %v558_v14 = vpop.permute.xlu0 %557 }
 0x13b   :  { %1018 = vmatprep.subr.bf16.mxu1 %v361_v25 }
 0x13e   :  { %1019 = vmatpush3.bf16.msra.mxu1 %v361_v25  ;;  %v568_v26 = vpop.permute.xlu0 %567 }
 0x141   :  { %1021 = vmatmul.mubr.bf16.vlgmr.msra.gmra.mrb[0].mxu1 %v1087_v27 }
 0x142   :  { %1024 = vmatprep.mubr.bf16.mxu1 %v1088_v28 }
 0x149   :  { %1025 = vmatmul.mubr.bf16.gmra.mrb[4].mxu1 %v1089_v29 }
 0x14a   :  { %1036 = vmatprep.mubr.msk.bf16.mxu1 %vm595_vm1, %v1090_v30 }
 0x214   :  { %v1022_v35 = vpop.f32.mrb[0].mxu1 }
 0x215   :  { %v485_v36 = vadd.f32 %v1022_v35, %v391_v33  ;;  %v476_v37 = vpop.f32.mrb[1].mxu1 }
 0x216   :  { %v477_v39 = vadd.f32 %v476_v37, %v381_v31  ;;  %v1023_v40 = vpop.f32.mrb[2].mxu1  ;;  %v573_v31 = vpop.permute.xlu1 %572 }
 0x217   :  { %v488_v41 = vadd.f32 %v1023_v40, %v396_v34  ;;  %v479_v42 = vpop.f32.mrb[3].mxu1  ;;  %v509_v45 = vmax.f32 %v485_v36, 0.0 }
 0x218   :  { %v480_v44 = vadd.f32 %v479_v42, %v386_v32  ;;  %v507_v47 = vmax.f32 %v477_v39, 0.0 }
 0x219   :  { %v510_v46 = vmax.f32 %v488_v41, 0.0 }
 0x21a   :  { %v508_v48 = vmax.f32 %v480_v44, 0.0  ;;  %v1122_v44 = vmov 0.0  }
 0x21b   :  { %v516_v49 = vpack.c.bf16 %v510_v46, %v509_v45  ;;  %v696_v45 = vpop.permute.xlu0 %695  ;;  %v701_v46 = vpop.permute.xlu1 %700 }
 0x21c   :  { %v515_v51 = vpack.c.bf16 %v508_v48, %v507_v47  ;;  %v1026_v52 = vpop.f32.mrb[4].mxu1 }
 0x21d   :  { %v501_v53 = vadd.f32 %v1026_v52, %v411_v50  ;;  %v492_v54 = vpop.f32.mrb[5].mxu1 }
 0x21e   :  { %v493_v56 = vadd.f32 %v492_v54, %v401_v38  ;;  %v1027_v57 = vpop.f32.mrb[6].mxu1  ;;  %1028 = vmatprep.subr.bf16.mxu1 %v515_v51 }
 0x21f   :  { %v504_v58 = vadd.f32 %v1027_v57, %v416_v55  ;;  %v495_v59 = vpop.f32.mrb[7].mxu1  ;;  %1029 = vmatpush3.bf16.msra.mxu1 %v515_v51  ;;  %v513_v61 = vmax.f32 %v501_v53, 0.0  ;;  %v706_v47 = vpop.permute.xlu0 %705 }
 0x220   :  { %v496_v60 = vadd.f32 %v495_v59, %v406_v43  ;;  %1030 = vmatprep.subr.bf16.mxu1 %v516_v49  ;;  %v511_v63 = vmax.f32 %v493_v56, 0.0  ;;  %v1095_v43 = vld [vmem:[%s1417_s1 + $0x88] sm:$0xff]   ;;  %v711_v51 = vpop.permute.xlu1 %710 }
 0x221   :  { %v514_v62 = vmax.f32 %v504_v58, 0.0 }
 0x222   :  { %v512_v0 = vmax.f32 %v496_v60, 0.0 }
 0x223   :  { %v518_v1 = vpack.c.bf16 %v514_v62, %v513_v61  ;;  %1031 = vmatpush3.bf16.msra.mxu1 %v516_v49 }
 0x224   :  { %v517_v2 = vpack.c.bf16 %v512_v0, %v511_v63  ;;  %v1096_v63 = vld [vmem:[%s1417_s1 + $0x90] sm:$0xff]   ;;  %v791_v0 = vpop.permute.xlu0 %790  ;;  %s1124_s1 = smov [#allocation2]  }
 0x225   :  { %s885_s25 = sshll.u32 %s1124_s1, 4  ;;  %s886_s25 = int_to_ptr.vmem [resolvable:$true] %s885_s25 }
 0x226   :  { %1032 = vmatprep.subr.bf16.mxu1 %v517_v2  ;;  %s1097_s26 = scalar_lea.vmem %s886_s25, 16  ;;  %s1101_s27 = scalar_lea.vmem %s886_s25, 32 }
 0x227   :  { %1033 = vmatpush3.bf16.msra.mxu1 %v517_v2  ;;  %p1098_p0 = scmp.ne.s32.totalorder %s886_s25, %s1097_s26  ;;  %p1102_p1 = scmp.lt.s32.totalorder %s886_s25, %s886_s25 }
 0x228   :  { %1034 = vmatprep.subr.bf16.mxu1 %v518_v1  ;;  %p1103_p2 = scmp.lt.s32.totalorder %s1101_s27, %s1097_s26 }
 0x22a   :  { %p1104_p3 = por %p1103_p2, %p1102_p1 }
 0x22b   :  { %1035 = vmatpush3.bf16.msra.mxu1 %v518_v1  ;;  %v796_v1 = vpop.permute.xlu1 %795 }
 0x22c   :  { %p1105_p4 = pnand %p1104_p3, %p1098_p0 }
 0x22e   :  { %1037 = vmatmul.mubr.msk.bf16.vlgmr.msra.gmra.mrb[8].mxu1 %vm595_vm1, %v1091_v3 }
 0x22f   :  { %1040 = vmatprep.mubr.msk.bf16.mxu1 %vm595_vm1, %v1092_v4 }
 0x236   :  { %1041 = vmatmul.mubr.msk.bf16.gmra.mrb[12].mxu1 %vm595_vm1, %v1093_v5 }
 0x237   :  { %1052 = vmatprep.mubr.msk.bf16.mxu1 %vm595_vm1, %v1094_v6 }
 0x301   :  { %v1038_v11 = vpop.f32.mrb[8].mxu1 }
 0x302   :  { %v651_v12 = vadd.f32 %v1038_v11, %v548_v9  ;;  %v642_v13 = vpop.f32.mrb[9].mxu1  ;;  %v860_v11 = vpop.permute.xlu1 %859 }
 0x303   :  { %v643_v15 = vadd.f32 %v642_v13, %v538_v7  ;;  %v1039_v16 = vpop.f32.mrb[10].mxu1 }
 0x304   :  { %v654_v17 = vadd.f32 %v1039_v16, %v553_v10  ;;  %v645_v18 = vpop.f32.mrb[11].mxu1  ;;  %v675_v21 = vmax.f32 %v651_v12, 0.0  ;;  %v855_v10 = vpop.permute.xlu0 %854 }
 0x305   :  { %v646_v20 = vadd.f32 %v645_v18, %v543_v8  ;;  %v673_v23 = vmax.f32 %v643_v15, 0.0 }
 0x306   :  { %v676_v22 = vmax.f32 %v654_v17, 0.0 }
 0x307   :  { %v674_v24 = vmax.f32 %v646_v20, 0.0 }
 0x308   :  { %v682_v25 = vpack.c.bf16 %v676_v22, %v675_v21  ;;  %v874_v21 = vpop.permute.xlu0 %873 }
 0x309   :  { %v681_v27 = vpack.c.bf16 %v674_v24, %v673_v23  ;;  %v1042_v28 = vpop.f32.mrb[12].mxu1 }
 0x30a   :  { %v667_v29 = vadd.f32 %v1042_v28, %v568_v26  ;;  %v658_v30 = vpop.f32.mrb[13].mxu1 }
 0x30b   :  { %v659_v32 = vadd.f32 %v658_v30, %v558_v14  ;;  %v1043_v33 = vpop.f32.mrb[14].mxu1  ;;  %1044 = vmatprep.subr.bf16.mxu1 %v681_v27 }
 0x30c   :  { %v670_v34 = vadd.f32 %v1043_v33, %v573_v31  ;;  %v661_v35 = vpop.f32.mrb[15].mxu1  ;;  %1045 = vmatpush3.bf16.msra.mxu1 %v681_v27  ;;  %v679_v37 = vmax.f32 %v667_v29, 0.0 }
 0x30d   :  { %v662_v36 = vadd.f32 %v661_v35, %v563_v19  ;;  %1046 = vmatprep.subr.bf16.mxu1 %v682_v25  ;;  %v677_v39 = vmax.f32 %v659_v32, 0.0 }
 0x30e   :  { %v680_v38 = vmax.f32 %v670_v34, 0.0 }
 0x30f   :  { %v678_v40 = vmax.f32 %v662_v36, 0.0 }
 0x310   :  { %v684_v41 = vpack.c.bf16 %v680_v38, %v679_v37  ;;  %1047 = vmatpush3.bf16.msra.mxu1 %v682_v25 }
 0x311   :  { %v683_v42 = vpack.c.bf16 %v678_v40, %v677_v39 }
 0x313   :  { %1048 = vmatprep.subr.bf16.mxu1 %v683_v42 }
 0x314   :  { %1049 = vmatpush3.bf16.msra.mxu1 %v683_v42 }
 0x315   :  { %1050 = vmatprep.subr.bf16.mxu1 %v684_v41 }
 0x318   :  { %1051 = vmatpush3.bf16.msra.mxu1 %v684_v41 }
 0x319   :  { %1056 = vmatprep.subr.bf16.mxu1 %v1122_v44 }
 0x31b   :  { %1053 = vmatmul.mubr.msk.bf16.vlgmr.msra.gmra.mrb[16].mxu1 %vm595_vm1, %v1095_v43 }
 0x31c   :  { %1060 = vmatprep.mubr.msk.bf16.mxu1 %vm1123_vm2, %v1122_v44 }
 0x3ee   :  { %v1054_v48 = vpop.f32.mrb[16].mxu1 }
 0x3ef   :  { %v772_v49 = vadd.f32 %v1054_v48, %v706_v47  ;;  %v763_v50 = vpop.f32.mrb[17].mxu1 }
 0x3f0   :  { %v764_v52 = vadd.f32 %v763_v50, %v696_v45  ;;  %v1055_v53 = vpop.f32.mrb[18].mxu1 }
 0x3f1   :  { %v775_v54 = vadd.f32 %v1055_v53, %v711_v51  ;;  %v766_v55 = vpop.f32.mrb[19].mxu1  ;;  %v780_v57 = vmax.f32 %v772_v49, 0.0 }
 0x3f2   :  { %v767_v56 = vadd.f32 %v766_v55, %v701_v46  ;;  %v778_v59 = vmax.f32 %v764_v52, 0.0 }
 0x3f3   :  { %v781_v58 = vmax.f32 %v775_v54, 0.0 }
 0x3f4   :  { %v779_v60 = vmax.f32 %v767_v56, 0.0 }
 0x3f5   :  { %v783_v61 = vpack.c.bf16 %v781_v58, %v780_v57 }
 0x3f6   :  { %v782_v62 = vpack.c.bf16 %v779_v60, %v778_v59 }
 0x3f8   :  { %1057 = vmatpush3.bf16.msra.mxu1 %v782_v62 }
 0x3f9   :  { %1058 = vmatprep.subr.bf16.mxu1 %v1122_v44 }
 0x3fc   :  { %1059 = vmatpush3.bf16.msra.mxu1 %v783_v61 }
 0x3ff   :  { %1061 = vmatmul.mubr.msk.bf16.vlgmr.msra.gmra.mrb[20].mxu1 %vm192_vm0, %v1096_v63 }
 0x4d2   :  { %v840_v2 = vpop.f32.mrb[20].mxu1 }
 0x4d3   :  { %v841_v3 = vadd.f32 %v840_v2, %v791_v0  ;;  %v1062_v4 = vpop.f32.mrb[21].mxu1 }
 0x4d4   :  { %v843_v5 = vpop.f32.mrb[22].mxu1 }
 0x4d5   :  { %v847_v6 = vmax.f32 %v841_v3, 0.0  ;;  %v844_v7 = vadd.f32 %v843_v5, %v796_v1  ;;  %v1063_v8 = vpop.f32.mrb[23].mxu1 }
 0x4d7   :  { %v848_v9 = vmax.f32 %v844_v7, 0.0  ;;  %v862_v12 = vmul.f32 %v855_v10, %v847_v6 }
 0x4d9   :  { %v863_v13 = vmul.f32 %v860_v11, %v848_v9 }
 0x4db   :  { %v864_v14 = vadd.f32 %v863_v13, %v862_v12 }
 0x4dd   :  { %v865_v15 = vrot.slane %v864_v14, 4 }
 0x4df   :  { %v866_v16 = vadd.f32 %v865_v15, %v864_v14 }
 0x4e1   :  { %v867_v17 = vrot.slane %v866_v16, 2 }
 0x4e3   :  { %v868_v18 = vadd.f32 %v867_v17, %v866_v16 }
 0x4e5   :  { %v869_v19 = vrot.slane %v868_v18, 1 }
 0x4e7   :  { %v870_v20 = vadd.f32 %v869_v19, %v868_v18 }
 0x4e9   :  { %v876_v22 = vadd.f32 %v874_v21, %v870_v20 }
 0x4eb   :  { %v877_v23 = vmax.f32 %v876_v22, 0.0 }
 0x4ed   :  { %878 = vst [vmem:[#allocation2] sm:$0x1] %v877_v23 }
 0x4ee   :  { %1108 = shalt.err (!%p1105_p4)
}
 0x4ef   :  { %s1109_s30 = scalar_lea.hbm %s1419_s3, 16 }
 0x4f0   :  { %p1110_p5 = scmp.ne.s32.totalorder %s1419_s3, %s1109_s30  ;;  %p1113_p6 = scmp.lt.u32.totalorder %s1109_s30, %s1419_s3 }
 0x4f2   :  { %p1115_p7 = pnand %p1113_p6, %p1110_p5 }
 0x4f4   :  { %1118 = shalt.err (!%p1115_p7)
}
 0x4f5   :  { %888 = dma.vmem_to_hbm [thread:$0]  %s886_s25, 16, %s1419_s3, [#allocation3]  }
 0x4f6   :  { %1119 = dma.done.wait [#allocation3], 16  }
 0x4f7   :  { %1120 = vsyncadd [#allocation3], 4294967280 }
 0x4f8   :  { %892 = vsyncpa [#allocation3], 1 }

</bundles_post_ra>
